<compile_context>
chip_gen: v7x
topology: tpu7x:2x2x1
jax: 0.10.0
libtpu: 0.0.40
codegen_flags: <defaults>
</compile_context>

<pallas_src>
import math

import jax
import jax.numpy as jnp
from jax.experimental import pallas as pl
from jax.experimental.pallas import tpu as pltpu


def embed_kernel(x_ref, w_ref, pe_ref, o_ref):
    # x_ref : (TR, W*C)   lane-dense input rows
    # w_ref : (W*C, W*D)  block-diagonal 1x1-conv weight (constant block index -> fetched once)
    # pe_ref: (TR, D)     compact positional-encoding (+ bias) rows for this tile
    # o_ref : (TR, W*D)   lane-dense output rows
    d = pe_ref.shape[-1]
    w_reps = o_ref.shape[-1] // d
    y = jnp.dot(x_ref[...], w_ref[...], preferred_element_type=jnp.float32)  # (TR, W*D)
    # Expand pe along lanes on-chip: column (w*D + d) <- pe[:, d].
    pe = jnp.tile(pe_ref[...].astype(jnp.float32), (1, w_reps))              # (TR, W*D)
    o_ref[...] = (y + pe).astype(o_ref.dtype)


def prepare_embedding_params(w, bias, pe, W):
    """One-time per model: fold the conv bias into pe and build the block-diagonal weight.

    w: (C, D) matmul form of the Conv2d(C, D, kernel_size=1) weight.
    bias: (D,) or None (None when start_pos != 0, matching PyTorch).
    pe: (H, D) positional-encoding slice.
    Returns (w_bd: (W*C, W*D), pe_b: (H, D))."""
    C, D = w.shape
    pe_b = (pe if bias is None else pe + bias[None, :]).astype(jnp.float32)
    # NOTE: block-diagonal weight is W x redundant in MACs/bytes (O(W^2*C*D)); fine for
    # small W.  For very large W (or f32 on v5e) prefer the minimal (rows*W, C)@(C, D) form.
    w_bd = jnp.einsum("uv,cd->ucvd", jnp.eye(W, dtype=w.dtype), w).reshape(W * C, W * D)
    return w_bd, pe_b


def _vmem_budget():
    """(tile_budget_bytes, vmem_limit_bytes) per TPU generation."""
    try:
        kind = jax.devices()[0].device_kind.lower()
    except Exception:
        kind = ""
    if "v5" in kind or "v6" in kind:               # 128 MiB physical VMEM
        return 40 * 1024 * 1024, 96 * 1024 * 1024
    return 24 * 1024 * 1024, 48 * 1024 * 1024      # v7x (64 MiB) / unknown: conservative


def data_embedding(x, w_bd, pe_b, *, out_dtype=None):
    """x: (B,H,W,C), w_bd: (W*C, W*D), pe_b: (H, D) -> (B,H,W,D)."""
    B, H, W, C = x.shape
    D = pe_b.shape[-1]
    assert w_bd.shape == (W * C, W * D)
    out_dtype = out_dtype or x.dtype

    R = B * H
    x_flat = x.reshape(R, W * C)                   # contiguous reshape -> free

    # --- row-tile sizing: steady-state (double-buffered) tiles + resident weight in budget ---
    tile_budget, vmem_limit = _vmem_budget()
    esz = 4                                        # f32
    weight_bytes = 2 * (W * C) * (W * D) * esz     # worst case: weight double-buffered
    per_row = (2 * (W * C) + 2 * (W * D) + 2 * D) * esz
    avail = max(tile_budget - weight_bytes, 8 * per_row)
    tr_cap = max(8, avail // per_row)

    TR = None
    if H % 8 == 0:
        cands = [t for t in range(8, H + 1, 8) if H % t == 0 and t <= tr_cap]
        if cands:
            TR = max(cands)
            if R // TR < 2:                        # keep >= 2 grid steps (v7x megacore)
                smaller = [t for t in cands if R // t >= 2]
                if smaller:
                    TR = max(smaller)

    if TR is None:
        # Fallback (H not 8-aligned): single full-extent tile; replicate pe per batch row
        # (still W x smaller than a pre-broadcast (H, W*D) table).
        pe_rows = jnp.tile(pe_b, (B, 1))           # (B*H, D)
        TR = R
        pe_index = lambda r: (0, 0)
    else:
        pe_rows = pe_b                             # (H, D)
        tiles_per_h = H // TR
        if tiles_per_h == 1:
            pe_index = lambda r: (0, 0)            # constant block index -> fetched once
        else:
            pe_index = lambda r, t=tiles_per_h: (r % t, 0)

    grid = (R // TR,)

    out_flat = pl.pallas_call(
        embed_kernel,
        out_shape=jax.ShapeDtypeStruct((R, W * D), out_dtype),
        grid_spec=pltpu.PrefetchScalarGridSpec(
            num_scalar_prefetch=0,
            grid=grid,
            in_specs=[
                pl.BlockSpec((TR, W * C), lambda r: (r, 0)),
                pl.BlockSpec((W * C, W * D), lambda r: (0, 0)),   # resident weight
                pl.BlockSpec((TR, D), pe_index),                  # compact pe rows
            ],
            out_specs=pl.BlockSpec((TR, W * D), lambda r: (r, 0)),
        ),
        compiler_params=pltpu.CompilerParams(
            dimension_semantics=("parallel",),
            vmem_limit_bytes=vmem_limit,
        ),
    )(x_flat, w_bd, pe_rows)

    return out_flat.reshape(B, H, W, D)


def make_positional_encoding(d_model, seq_len, start_pos=0, max_len=5000):
    """Reproduces PositionalEmbedding buffer construction, returns (seq_len, d_model)."""
    position = jnp.arange(0, max_len, dtype=jnp.float32)[:, None]
    div_term = jnp.exp(jnp.arange(0, d_model, 2, dtype=jnp.float32)
                       * -(math.log(10000.0) / d_model))
    pe = jnp.zeros((max_len, d_model), dtype=jnp.float32)
    pe = pe.at[:, 0::2].set(jnp.sin(position * div_term))
    pe = pe.at[:, 1::2].set(jnp.cos(position * div_term))
    return pe[start_pos:start_pos + seq_len]


if __name__ == "__main__":
    # Small shapes: batch=2, seq(H)=8, segments(W)=16, channel=4, d_model=32
    B, H, W, C, D = 2, 8, 16, 4, 32
    start_pos = 0                                   # start_pos == 0 -> conv has a bias

    key = jax.random.PRNGKey(0)
    kx, kw, kb = jax.random.split(key, 3)

    x = jax.random.normal(kx, (B, H, W, C), dtype=jnp.float32)

    # Conv2d(C, D, kernel_size=1) weight (D, C, 1, 1); we store its matmul form (C, D).
    bound = 1.0 / math.sqrt(C)                      # fan_in = C * 1 * 1
    w_conv = jax.random.uniform(kw, (D, C), dtype=jnp.float32,
                                minval=-bound, maxval=bound)
    w = w_conv.T                                    # (C, D)
    bias = (jax.random.uniform(kb, (D,), dtype=jnp.float32,
                               minval=-bound, maxval=bound)
            if start_pos == 0 else None)            # no bias when start_pos != 0

    pe = make_positional_encoding(D, H, start_pos=start_pos)   # (H, D)

    # One-time parameter prep (kept out of the per-call path).
    w_bd, pe_b = prepare_embedding_params(w, bias, pe, W)

    out = data_embedding(x, w_bd, pe_b)
    out = jax.block_until_ready(out)

    # Pure-JAX reference: 1x1 conv == einsum over channel (+ bias) + pe broadcast over (B, W).
    ref = jnp.einsum("bhwc,cd->bhwd", x, w) + pe[None, :, None, :]
    if bias is not None:
        ref = ref + bias[None, None, None, :]
    assert out.shape == (B, H, W, D)
    assert jnp.allclose(out, ref, atol=1e-5, rtol=1e-5)

    print("KERNEL_OK")
</pallas_src>

<mosaic_0001>
module attributes {stable_mosaic.version = 11 : i64} {
  func.func @embed_kernel(%arg0: i32, %arg1: memref<8x64xf32, #tpu.memory_space<vmem>>, %arg2: memref<64x512xf32, #tpu.memory_space<vmem>>, %arg3: memref<8x32xf32, #tpu.memory_space<vmem>>, %arg4: memref<8x512xf32, #tpu.memory_space<vmem>>) attributes {dimension_semantics = [#tpu.dimension_semantics<parallel>], iteration_bounds = array<i64: 2>, scalar_prefetch = 0 : i64, scratch_operands = 0 : i64, tpu.core_type = #tpu.core_type<tc>, window_params = [{transform_indices = @transform_0, window_bounds = array<i64: 8, 64>}, {pipeline_mode = #tpu.pipeline_mode<synchronous>, transform_indices = @transform_1, window_bounds = array<i64: 64, 512>}, {pipeline_mode = #tpu.pipeline_mode<synchronous>, transform_indices = @transform_2, window_bounds = array<i64: 8, 32>}, {transform_indices = @transform_3, window_bounds = array<i64: 8, 512>}]} {
    %c0 = arith.constant 0 : index
    %c0_0 = arith.constant 0 : index
    %0 = vector.load %arg1[%c0, %c0_0] : memref<8x64xf32, #tpu.memory_space<vmem>>, vector<8x64xf32>
    %c0_1 = arith.constant 0 : index
    %c0_2 = arith.constant 0 : index
    %1 = vector.load %arg2[%c0_1, %c0_2] : memref<64x512xf32, #tpu.memory_space<vmem>>, vector<64x512xf32>
    %cst = arith.constant dense<0.000000e+00> : vector<8x512xf32>
    %2 = tpu.matmul %0, %1, %cst {dimension_numbers = #tpu.dot_dimension_numbers<[1], [0], [0], [1], [0, 0, 1, 1], [], []>} : vector<8x64xf32>, vector<64x512xf32>, vector<8x512xf32> -> vector<8x512xf32>
    %c0_3 = arith.constant 0 : index
    %c0_4 = arith.constant 0 : index
    %3 = vector.load %arg3[%c0_3, %c0_4] : memref<8x32xf32, #tpu.memory_space<vmem>>, vector<8x32xf32>
    %4 = tpu.concatenate %3, %3, %3, %3, %3, %3, %3, %3, %3, %3, %3, %3, %3, %3, %3, %3 in 1 : vector<8x32xf32>, vector<8x32xf32>, vector<8x32xf32>, vector<8x32xf32>, vector<8x32xf32>, vector<8x32xf32>, vector<8x32xf32>, vector<8x32xf32>, vector<8x32xf32>, vector<8x32xf32>, vector<8x32xf32>, vector<8x32xf32>, vector<8x32xf32>, vector<8x32xf32>, vector<8x32xf32>, vector<8x32xf32> -> vector<8x512xf32>
    %5 = arith.addf %2, %4 : vector<8x512xf32>
    %c0_5 = arith.constant 0 : index
    %c0_6 = arith.constant 0 : index
    %6 = vector.load %arg4[%c0_5, %c0_6] : memref<8x512xf32, #tpu.memory_space<vmem>>, vector<8x512xf32>
    tpu.vector_store %arg4[%c0_5, %c0_6], %5 {strides = array<i32>} : memref<8x512xf32, #tpu.memory_space<vmem>>, vector<8x512xf32>,
    return
  }
  func.func @transform_0(%arg0: i32) -> (i32, i32) {
    %c0_i32 = arith.constant 0 : i32
    %c0_i32_0 = arith.constant 0 : i32
    return %arg0, %c0_i32 : i32, i32
  }
  func.func @transform_1(%arg0: i32) -> (i32, i32) {
    %c0_i32 = arith.constant 0 : i32
    %c0_i32_0 = arith.constant 0 : i32
    %c0_i32_1 = arith.constant 0 : i32
    return %c0_i32, %c0_i32_0 : i32, i32
  }
  func.func @transform_2(%arg0: i32) -> (i32, i32) {
    %c0_i32 = arith.constant 0 : i32
    %c0_i32_0 = arith.constant 0 : i32
    %c0_i32_1 = arith.constant 0 : i32
    return %c0_i32, %c0_i32_0 : i32, i32
  }
  func.func @transform_3(%arg0: i32) -> (i32, i32) {
    %c0_i32 = arith.constant 0 : i32
    %c0_i32_0 = arith.constant 0 : i32
    return %arg0, %c0_i32 : i32, i32
  }
}

</mosaic_0001>

<bundles_post_ra>
// kernel: tpu_custom_call.1
= control target key start
LH: loop header
LB: loop body
LE: loop exit
PB: predicated region body
PF: predicated region fallthrough
CT: control target
= control target key end

     0   :  { %8 = vsyncpa [#allocation3], 0  ;;  %s1062_s0 = inlined_call_operand.hbm [shape: f32[16,64], index: 0, kind: input, shape index: {}]   ;;  %s1063_s1 = inlined_call_operand.hbm [shape: f32[64,512], index: 1, kind: input, shape index: {}]   ;;  %s1064_s2 = inlined_call_operand.hbm [shape: f32[8,32], index: 2, kind: input, shape index: {}]   ;;  %s1065_s3 = inlined_call_operand.hbm [shape: f32[16,512], index: 3, kind: output, shape index: {}]  }
   0x1   :  { %10 = vsyncpa [#allocation3 + $0x1], 0 }
   0x2   :  { %11 = vsyncpa [#allocation6], 0 }
   0x3   :  { %12 = vsyncpa [#allocation4], 0 }
   0x4   :  { %14 = vsyncpa [#allocation4 + $0x1], 0  ;;  %s829_s12 = smov 0   ;;  %s831_s13 = smov 0  }
   0x5   :  { %s833_s14 = smov 0   ;;  %s835_s15 = smov 0  }
   0x6 LB: > { %s850_s16 = sadd.s32 4294967295, %s797_s15   ;;  %s516_s17 = sadd.s32 4294967294, %s797_s15   ;;  %s797_s15 = sphi %s835_s15, %s1085_s15   ;;  %s793_s14 = sphi %s833_s14, %s1084_s14   ;;  %s789_s13 = sphi %s831_s13, %s1083_s13   ;;  %s785_s12 = sphi %s829_s12, %s1082_s12  }
   0x7   : > { %p40_p0 = scmp.ne.s32.totalorder %s789_s13, %s785_s12  ;;  %p1066_p1 = scmp.eq.s32.totalorder %s850_s16, 0 }
   0x8   : > { %p112_p3 = scmp.eq.s32.totalorder %s516_s17, 1  ;;  %p517_p5 = scmp.ge.s32.totalorder %s797_s15, 1 }
   0x9   : > { %p859_p4 = por %p1066_p1, %p40_p0  ;;  %p119_p7 = scmp.lt.s32.totalorder %s797_s15, 3 }
   0xa   : > { %p864_p6 = por %p112_p3, %p40_p0  ;;  %s799_s21 = smov [#allocation5]  }
   0xb   : > { %s1069_s18 = scalar_select %p859_p4, 1, 0 }
   0xc   : > { %s1070_s19 = scalar_select %p864_p6, 1, 0 }
   0xd   : > { %p869_p8 = pnand %p517_p5, %p119_p7  ;;  %s131_s22 = sshll.u32 %s799_s21, 4  ;;  %s873_s22 = int_to_ptr.vmem [resolvable:$true] %s131_s22 }
   0xe   : > { %s800_s24 = smov [#allocation7]   ;;  %s641_s28 = scalar_lea.hbm %s1063_s1, 4096 }
   0xf   : > { %p580_p9 = pneg %p869_p8  ;;  %s145_s25 = sshll.u32 %s800_s24, 4  ;;  %s884_s25 = int_to_ptr.vmem [resolvable:$true] %s145_s25 }
  0x10   : > { %p642_p12 = scmp.ne.s32.totalorder %s1063_s1, %s641_s28  ;;  %p648_p5 = scmp.lt.u32.totalorder %s641_s28, %s1063_s1 }
  0x11   : > { %p880_p11 = pnand %p580_p9, %p1066_p1 }
  0x13   : > { %p643_p13 = pneg %p880_p11 }
  0x15   : > { %p644_p0 = pnand %p643_p13, %p642_p12 }
  0x17   : > { %p645_p3 = pneg %p644_p0 }
  0x19   : > { %p650_p7 = pnand %p648_p5, %p645_p3 }
  0x1b   : > { %653 = shalt.err (!%p650_p7)
}
  0x1c   : > { %s654_s6 = scalar_lea.vmem %s873_s22, 4096  ;;  %p662_p2 = scmp.lt.s32.totalorder %s873_s22, %s873_s22 }
  0x1d   : > { %p655_p9 = scmp.ne.s32.totalorder %s873_s22, %s654_s6  ;;  %p663_p12 = scmp.lt.s32.totalorder %s654_s6, %s654_s6 }
  0x1f   : > { %p657_p10 = pnand %p655_p9, %p643_p13  ;;  %p664_p0 = por %p663_p12, %p662_p2 }
  0x21   : > { %p658_p1 = pneg %p657_p10 }
  0x23   : > { %p665_p6 = pnand %p664_p0, %p658_p1 }
  0x25   : > { %668 = shalt.err (!%p665_p6)
}
  0x26   : > { %s801_s7 = smov 512   ;;  %s802_s8 = smov 32  }
  0x27   : > { %583 = dma.hbm_to_vmem [thread:$0]  (!%p880_p11), %s1063_s1, 4096, %s873_s22, [#allocation6], %s801_s7, %s801_s7, %s802_s8  }
  0x28   : > { %s669_s21 = scalar_lea.hbm %s1064_s2, 128 }
  0x29   : > { %p670_p2 = scmp.ne.s32.totalorder %s1064_s2, %s669_s21  ;;  %p676_p10 = scmp.lt.u32.totalorder %s669_s21, %s1064_s2 }
  0x2b   : > { %p672_p1 = pnand %p670_p2, %p643_p13 }
  0x2d   : > { %p673_p6 = pneg %p672_p1 }
  0x2f   : > { %p678_p3 = pnand %p676_p10, %p673_p6 }
  0x31   : > { %681 = shalt.err (!%p678_p3)
}
  0x32   : > { %s682_s22 = scalar_lea.vmem %s884_s25, 128  ;;  %p690_p12 = scmp.lt.s32.totalorder %s884_s25, %s884_s25 }
  0x33   : > { %p683_p5 = scmp.ne.s32.totalorder %s884_s25, %s682_s22  ;;  %p691_p0 = scmp.lt.s32.totalorder %s682_s22, %s682_s22 }
  0x35   : > { %p685_p7 = pnand %p683_p5, %p643_p13  ;;  %p692_p2 = por %p691_p0, %p690_p12 }
  0x37   : > { %p686_p9 = pneg %p685_p7 }
  0x39   : > { %p693_p1 = pnand %p692_p2, %p686_p9 }
  0x3b   : > { %696 = shalt.err (!%p693_p1)
}
  0x3c   : > { %586 = dma.hbm_to_vmem [thread:$0]  (!%p880_p11), %s1064_s2, 128, %s884_s25, [#allocation6]  }
  0x3d   : > { %s939_s4 = sadd.s32 1, %s797_s15   ;;  %s27_s23 = sadd.s32 1, %s793_s14 }
  0x3e   : > { %s24_s5 = ssub.s32 %s797_s15, %s939_s4  ;;  %p34_p13 = scmp.ne.s32.totalorder %s793_s14, %s789_s13 }
  0x3f   : > { %p25_p6 = scmp.eq.s32.totalorder %s24_s5, 0  ;;  %p35_p10 = scmp.eq.s32.totalorder %s797_s15, 0 }
  0x40   : > { %p1073_p3 = scmp.eq.s32.totalorder %s850_s16, 1  ;;  %p597_p7 = scmp.lt.s32.totalorder %s797_s15, 2 }
  0x41   : > { %s955_s7 = scalar_select %p25_p6, %s793_s14, %s27_s23  }
  0x42   : > { %p949_p5 = por %p1073_p3, %p34_p13  ;;  %p36_p9 = por %p35_p10, %p34_p13 }
  0x43   : > { %s156_s8 = sand.u32 1, %s793_s14   ;;  %s522_s25 = sshll.u32 %s797_s15, 7 }
  0x44   : > { %s1074_s6 = scalar_select %p949_p5, 1, 0 }
  0x45   : > { %s521_s9 = sshll.u32 %s156_s8, 3  ;;  %s962_s17 = scalar_lea.hbm %s1062_s0, %s522_s25 }
  0x46   : > { %s160_s21 = scalar_lea.vmem [#allocation2], %s521_s9  ;;  %p966_p11 = pnand %p597_p7, %p36_p9 }
  0x47   : > { %s167_s24 = sshll.u32 %s160_s21, 4  ;;  %s157_s27 = scalar_lea.sflag [#allocation3], %s156_s8  ;;  %s964_s24 = int_to_ptr.vmem [resolvable:$true] %s167_s24 }
  0x48   : > { %s697_s28 = scalar_lea.hbm %s962_s17, 128  ;;  %p699_p0 = pneg %p966_p11 }
  0x49   : > { %p698_p12 = scmp.ne.s32.totalorder %s962_s17, %s697_s28  ;;  %s702_s30 = scalar_lea.hbm %s1062_s0, 256 }
  0x4a   : > { %p703_p13 = scmp.lt.u32.totalorder %s962_s17, %s1062_s0  ;;  %p704_p6 = scmp.lt.u32.totalorder %s702_s30, %s697_s28 }
  0x4b   : > { %p700_p2 = pnand %p699_p0, %p698_p12  ;;  %p706_p3 = scmp.lt.u32.totalorder %s697_s28, %s962_s17 }
  0x4c   : > { %p705_p10 = por %p704_p6, %p703_p13 }
  0x4d   : > { %p701_p1 = pneg %p700_p2 }
  0x4e   : > { %p707_p7 = por %p706_p3, %p705_p10 }
  0x50   : > { %p708_p9 = pnand %p707_p7, %p701_p1 }
  0x52   : > { %711 = shalt.err (!%p708_p9)
}
  0x53   : > { %s712_s8 = scalar_lea.vmem %s964_s24, 128  ;;  %s803_s9 = smov [#allocation2]  }
  0x54   : > { %p713_p12 = scmp.ne.s32.totalorder %s964_s24, %s712_s8  ;;  %s717_s25 = sshll.u32 %s803_s9, 4  ;;  %s718_s25 = int_to_ptr.vmem [resolvable:$false] %s717_s25 }
  0x55   : > { %s719_s10 = scalar_lea.vmem %s718_s25, 256  ;;  %p720_p4 = scmp.lt.s32.totalorder %s964_s24, %s718_s25 }
  0x56   : > { %p715_p2 = pnand %p713_p12, %p699_p0  ;;  %p721_p13 = scmp.lt.s32.totalorder %s719_s10, %s712_s8 }
  0x58   : > { %p716_p5 = pneg %p715_p2  ;;  %p722_p6 = por %p721_p13, %p720_p4 }
  0x5a   : > { %p723_p10 = pnand %p722_p6, %p716_p5 }
  0x5c   : > { %726 = shalt.err (!%p723_p10)
}
  0x5d   : > { %590 = dma.hbm_to_vmem [thread:$0]  (!%p966_p11), %s962_s17, 128, %s964_s24, %s157_s27  }
  0x5e   : > { %176 = sbr.rel (%p869_p8) target bundleno = 355 (0x163), region = 32  ;;  %s998_s11 = sand.u32 (!%p869_p8), 1, %s789_s13  }
  0x5f   : > { %s524_s21 = sshll.u32 (!%p869_p8), %s998_s11, 3  ;;  %s179_s28 = scalar_lea.sflag (!%p869_p8), [#allocation3], %s998_s11 }
  0x60   : > { %s1002_s22 = scalar_lea.vmem (!%p869_p8), [#allocation2], %s524_s21  ;;  %p1076_p4 = scmp.ne.s32.totalorder (!%p869_p8), %s1069_s18, 0 }
  0x65   : > { %772 = dma.done.wait (%p1076_p4), %s179_s28, 128  }
  0x66   : > { %774 = vsyncadd (%p1076_p4), %s179_s28, 4294967168  ;;  %p1077_p5 = scmp.eq.s32.totalorder %s850_s16, 0 }
  0x68   : > { %776 = dma.done.wait (%p1077_p5), [#allocation6], 4224   ;;  %p1078_p8 = pmov %p1077_p5 }
  0x69   : > { %v804_v0 = vmov 0.0   ;;  %v215_v1 = vld [vmem:[#allocation5 + $0x8] sm:$0xff]  ;;  %v217_v3 = vld [vmem:[#allocation5 + $0x18] sm:$0xff]  ;;  %v214_v6 = vld [vmem:[#allocation5] sm:$0xff]  ;;  %s805_s18 = smov 32   ;;  %s806_s20 = smov 96  }
  0x6a   : > { %778 = vsyncadd (%p1078_p8), [#allocation6], 4294963072  ;;  %330 = vmatprep.mubr.f32.mxu0 %v804_v0  ;;  %401 = vmatprep.mubr.f32.mxu1 %v804_v0  ;;  %v219_v2 = vld [vmem:[#allocation5 + $0x28] sm:$0xff]  ;;  %v221_v5 = vld [vmem:[#allocation5 + $0x38] sm:$0xff]  ;;  %vm259_vm0 = vcmask 523264   ;;  %s807_s17 = smov 64  }
  0x6b   : > { %v536_v4 = vpack.c.bf16 %v219_v2, %v215_v1  ;;  %v218_v7 = vld [vmem:[#allocation5 + $0x20] sm:$0xff]  ;;  %v552_v8 = vpack.c.bf16 %v221_v5, %v217_v3  ;;  %v216_v10 = vld [vmem:[#allocation5 + $0x10] sm:$0xff]  ;;  %v223_v12 = vld [vmem:[#allocation5 + $0x48] sm:$0xff]  ;;  %vm257_vm1 = vcmask 261120   ;;  %s527_s24 = sshll.u32 %s998_s11, 5  ;;  %vm261_vm2 = vcmask 785408  }
  0x6c   : > { %v538_v9 = vpack.c.bf16 %v218_v7, %v214_v6  ;;  %v220_v11 = vld [vmem:[#allocation5 + $0x30] sm:$0xff]  ;;  %v227_v14 = vld [vmem:[#allocation5 + $0x68] sm:$0xff]  ;;  %v225_v15 = vld [vmem:[#allocation5 + $0x58] sm:$0xff]  ;;  %s535_s26 = sshll.u32 %s850_s16, 9  ;;  %s212_s27 = scalar_lea.vmem [#allocation8], %s527_s24 }
  0x6d   : > { %537 = vmatprep.subr.bf16.mxu0 %v536_v4  ;;  %v554_v13 = vpack.c.bf16 %v220_v11, %v216_v10  ;;  %v229_v16 = vld [vmem:[#allocation5 + $0x78] sm:$0xff]  ;;  %553 = vmatprep.subr.bf16.mxu1 %v552_v8  ;;  %v540_v17 = vpack.c.bf16 %v227_v14, %v223_v12  ;;  %v222_v19 = vld [vmem:[#allocation5 + $0x40] sm:$0xff]  ;;  %v224_v21 = vld [vmem:[#allocation5 + $0x50] sm:$0xff]  ;;  %s427_s29 = sshll.u32 %s212_s27, 4  ;;  %s1018_s5 = scalar_lea.hbm %s1065_s3, %s535_s26  ;;  %s1020_s29 = int_to_ptr.vmem [resolvable:$true] %s427_s29 }
  0x6e   : > { %539 = vmatpush1.bf16.msra.mxu0 %v538_v9  ;;  %v556_v18 = vpack.c.bf16 %v229_v16, %v225_v15  ;;  %v226_v20 = vld [vmem:[#allocation5 + $0x60] sm:$0xff]  ;;  %v228_v23 = vld [vmem:[#allocation5 + $0x70] sm:$0xff]  ;;  %v231_v24 = vld [vmem:[#allocation5 + $0x88] sm:$0xff]  ;;  %s413_s16 = scalar_lea.sflag [#allocation4], %s998_s11  ;;  %s727_s8 = scalar_lea.vmem %s1020_s29, 512 }
  0x6f   : > { %555 = vmatpush1.bf16.msra.mxu1 %v554_v13  ;;  %v542_v22 = vpack.c.bf16 %v226_v20, %v222_v19  ;;  %v235_v25 = vld [vmem:[#allocation5 + $0xa8] sm:$0xff]  ;;  %541 = vmatprep.subr.bf16.mxu0 %v540_v17  ;;  %v558_v26 = vpack.c.bf16 %v228_v23, %v224_v21  ;;  %v233_v28 = vld [vmem:[#allocation5 + $0x98] sm:$0xff]  ;;  %v230_v30 = vld [vmem:[#allocation5 + $0x80] sm:$0xff]  ;;  %p728_p11 = scmp.ne.s32.totalorder %s1020_s29, %s727_s8  ;;  %p1079_p0 = scmp.ne.s32.totalorder %s1074_s6, 0 }
  0x70   : > { %557 = vmatprep.subr.bf16.mxu1 %v556_v18  ;;  %v544_v27 = vpack.c.bf16 %v235_v25, %v231_v24  ;;  %v237_v29 = vld [vmem:[#allocation5 + $0xb8] sm:$0xff]  ;;  %v234_v32 = vld [vmem:[#allocation5 + $0xa0] sm:$0xff]  ;;  %v232_v33 = vld [vmem:[#allocation5 + $0x90] sm:$0xff]  ;;  %s808_s9 = smov [#allocation8]  }
  0x71   : > { %v560_v31 = vpack.c.bf16 %v237_v29, %v233_v28  ;;  %v236_v34 = vld [vmem:[#allocation5 + $0xb0] sm:$0xff]  ;;  %v546_v35 = vpack.c.bf16 %v234_v32, %v230_v30  ;;  %v239_v36 = vld [vmem:[#allocation5 + $0xc8] sm:$0xff]  ;;  %v241_v38 = vld [vmem:[#allocation5 + $0xd8] sm:$0xff]  ;;  %p729_p1 = pnand %p728_p11, %p1079_p0  ;;  %s731_s25 = sshll.u32 %s808_s9, 4  ;;  %s732_s25 = int_to_ptr.vmem [resolvable:$false] %s731_s25 }
  0x72   : > { %543 = vmatpush1.bf16.msra.mxu0 %v542_v22  ;;  %v243_v37 = vld [vmem:[#allocation5 + $0xe8] sm:$0xff]  ;;  %v562_v39 = vpack.c.bf16 %v236_v34, %v232_v33  ;;  %v245_v41 = vld [vmem:[#allocation5 + $0xf8] sm:$0xff]  ;;  %v238_v42 = vld [vmem:[#allocation5 + $0xc0] sm:$0xff]  ;;  %s733_s10 = scalar_lea.vmem %s732_s25, 1024  ;;  %p734_p7 = scmp.lt.s32.totalorder %s1020_s29, %s732_s25 }
  0x73   : > { %559 = vmatpush1.bf16.msra.mxu1 %v558_v26  ;;  %545 = vmatprep.subr.bf16.mxu0 %v544_v27  ;;  %v548_v40 = vpack.c.bf16 %v243_v37, %v239_v36  ;;  %v242_v43 = vld [vmem:[#allocation5 + $0xe0] sm:$0xff]  ;;  %v564_v44 = vpack.c.bf16 %v245_v41, %v241_v38  ;;  %v240_v45 = vld [vmem:[#allocation5 + $0xd0] sm:$0xff]  ;;  %p730_p3 = pneg %p729_p1  ;;  %p735_p9 = scmp.lt.s32.totalorder %s733_s10, %s727_s8 }
  0x74   : > { %561 = vmatprep.subr.bf16.mxu1 %v560_v31  ;;  %v244_v46 = vld [vmem:[#allocation5 + $0xf0] sm:$0xff]  ;;  %v246_v47 = vld [vmem:[#allocation7] sm:$0xff]  ;;  %v550_v48 = vpack.c.bf16 %v242_v43, %v238_v42 }
  0x75   : > { %248 = vrot.lane.b32.xlu0 %v246_v47, %s805_s18  ;;  %v566_v49 = vpack.c.bf16 %v244_v46, %v240_v45  ;;  %254 = vrot.lane.b32.xlu1 %v246_v47, %s806_s20  ;;  %v213_v50 = vld [vmem:[%s1002_s22] sm:$0xff]  ;;  %p736_p12 = por %p735_p9, %p734_p7 }
  0x76   : > { %547 = vmatpush1.bf16.msra.mxu0 %v546_v35 }
  0x77   : > { %563 = vmatpush1.bf16.msra.mxu1 %v562_v39  ;;  %549 = vmatprep.subr.bf16.mxu0 %v548_v40  ;;  %p737_p2 = pnand %p736_p12, %p730_p3 }
  0x78   : > { %565 = vmatprep.subr.bf16.mxu1 %v564_v44 }
  0x79   : > { %251 = vrot.lane.b32.xlu0 %v246_v47, %s807_s17 }
  0x7a   : > { %551 = vmatpush1.bf16.msra.mxu0 %v550_v48 }
  0x7b   : > { %567 = vmatpush1.bf16.msra.mxu1 %v566_v49 }
  0x7d   : > { %528 = vmatmul.mubr.msk.f32.vlgmr.msra.gmra.mrb[0].mxu0 %vm259_vm0, %v213_v50 }
  0x7e   : > { %529 = vmatmul.mubr.msk.f32.vlgmr.msra.gmra.mrb[0].mxu1 %vm259_vm0, %v213_v50 }
  0xe7   : > { %v249_v51 = vpop.permute.xlu0 %248  ;;  %v255_v55 = vpop.permute.xlu1 %254 }
  0xe8   : > { %v258_v52 = vsel %vm257_vm1, %v246_v47, %v249_v51 }
  0xeb   : > { %v252_v53 = vpop.permute.xlu0 %251 }
  0xec   : > { %v260_v54 = vsel %vm259_vm0, %v258_v52, %v252_v53 }
  0xed   : > { %v262_v56 = vsel %vm261_vm2, %v260_v54, %v255_v55 }
 0x150   : > { %v332_v57 = vpop.f32.mrb[0].mxu0 }
 0x151   : > { %v333_v58 = vadd.f32 %v332_v57, %v262_v56  ;;  %v403_v59 = vpop.f32.mrb[0].mxu1  ;;  %v334_v60 = vpop.f32.mrb[1].mxu0 }
 0x152   : > { %v404_v61 = vadd.f32 %v403_v59, %v262_v56  ;;  %v335_v62 = vadd.f32 %v334_v60, %v262_v56  ;;  %v405_v63 = vpop.f32.mrb[1].mxu1 }
 0x153   : > { %408 = vst [vmem:[%s212_s27] sm:$0xff] %v333_v58  ;;  %v406_v0 = vadd.f32 %v405_v63, %v262_v56 }
 0x154   : > { %410 = vst [vmem:[%s212_s27 + $0x10] sm:$0xff] %v404_v61  ;;  %409 = vst [vmem:[%s212_s27 + $0x8] sm:$0xff] %v335_v62 }
 0x155   : > { %411 = vst [vmem:[%s212_s27 + $0x18] sm:$0xff] %v406_v0 }
 0x156   : > { %740 = shalt.err (!%p737_p2)
}
 0x157   : > { %s741_s11 = scalar_lea.hbm %s1018_s5, 512  ;;  %s745_s22 = scalar_lea.hbm %s1065_s3, 1024 }
 0x158   : > { %p742_p13 = scmp.ne.s32.totalorder %s1018_s5, %s741_s11  ;;  %p746_p4 = scmp.lt.u32.totalorder %s1018_s5, %s1065_s3 }
 0x159   : > { %p747_p5 = scmp.lt.u32.totalorder %s745_s22, %s741_s11  ;;  %p749_p11 = scmp.lt.u32.totalorder %s741_s11, %s1018_s5 }
 0x15a   : > { %p743_p6 = pnand %p742_p13, %p1079_p0 }
 0x15b   : > { %p748_p8 = por %p747_p5, %p746_p4 }
 0x15c   : > { %p744_p10 = pneg %p743_p6 }
 0x15d   : > { %p750_p1 = por %p749_p11, %p748_p8 }
 0x15f   : > { %p751_p3 = pnand %p750_p1, %p744_p10 }
 0x161   : > { %754 = shalt.err (!%p751_p3)
}
 0x162   : > { %578 = dma.vmem_to_hbm [thread:$0]  (%p1079_p0), %s1020_s29, 512, %s1018_s5, %s413_s16  }
 0x163 PF: > { %s439_s17 = sand.u32 1, %s785_s12   ;;  %p1080_p7 = scmp.ne.s32.totalorder %s1070_s19, 0 }
 0x164   : > { %p1081_p9 = scmp.ge.s32.totalorder %s797_s15, 2  ;;  %s440_s24 = scalar_lea.sflag [#allocation4], %s439_s17 }
 0x166   : > { %p592_p12 = pnand %p1081_p9, %p1080_p7 }
 0x168   : > { %780 = dma.done.wait (!%p592_p12), %s440_s24, 512  }
 0x169   : > { %782 = vsyncadd (!%p592_p12), %s440_s24, 4294966784  ;;  %p17_p2 = scmp.ge.s32.totalorder %s939_s4, 4   ;;  %s1082_s12 = smov %s789_s13 }
 0x16a   : > { %s1083_s13 = smov %s793_s14  ;;  %s1084_s14 = smov %s955_s7 }
 0x16b   : > { %s1085_s15 = smov %s939_s4  ;;  %19 = sbr.rel (!%p17_p2) target bundleno = 6 (0x6), region = 85 }
 0x172   :  { %445 = vsyncpa [#allocation3], 1 }
 0x173   :  { %447 = vsyncpa [#allocation3 + $0x1], 1 }
 0x174   :  { %448 = vsyncpa [#allocation6], 1 }
 0x175   :  { %449 = vsyncpa [#allocation4], 1 }
 0x176   :  { %451 = vsyncpa [#allocation4 + $0x1], 1 }

</bundles_post_ra>
